<compile_context>
chip_gen: v6e
topology: v6e:2x2x1
jax: 0.10.0
libtpu: 0.0.40
codegen_flags: <defaults>
</compile_context>

<pallas_src>
import functools

import jax
import jax.numpy as jnp
from jax import lax
from jax.experimental import pallas as pl
from jax.experimental.pallas import tpu as pltpu

_LANES = 128
_SUBLANES = 8

_CORE_PARALLEL = getattr(pltpu, "CORE_PARALLEL", pltpu.PARALLEL)


def _cdiv(a, b):
    return -(-a // b)


def _round_up(a, b):
    return _cdiv(a, b) * b


def _sublane_tile(dtype):
    # Native sublane tile: 8 for 4-byte, 16 for 2-byte, 32 for 1-byte dtypes.
    return max(_SUBLANES, 32 // jnp.dtype(dtype).itemsize)


def _num_tensorcores():
    # v7x exposes 2 TensorCores per chip to one Pallas kernel; v5e/v6e have 1.
    try:
        kind = jax.devices()[0].device_kind.lower()
    except Exception:
        return 1
    return 2 if ("v7" in kind or "tpu7" in kind) else 1


def _pow_focal(q, gamma):
    # Keep the modulating factor off the EUP: integer gamma -> multiplies only.
    if isinstance(gamma, int):
        if gamma == 0:
            return jnp.ones_like(q)
        if gamma == 1:
            return q
        if gamma == 2:
            return q * q
        return lax.integer_pow(q, gamma)
    return q ** gamma


def _focal_terms(flag_ref, x_ref, gamma):
    x = x_ref[...].astype(jnp.float32)
    # targets[0][0][0] == 1 -> probs = sigmoid(x); otherwise probs = 1 - sigmoid(x)
    # = sigmoid(-x).  Exact `== 1` test, matching the PyTorch reference.
    sign = jnp.where(flag_ref[0] == 1, 1.0, -1.0).astype(jnp.float32)
    probs = jax.nn.sigmoid(sign * x)
    # NOTE: log(probs) can be -inf for extreme logits; this matches the PyTorch
    # reference exactly (a softplus-based log-sigmoid would be safer if allowed).
    return -_pow_focal(1.0 - probs, gamma) * jnp.log(probs)


def _fold_into(acc_ref, loss, block_rows):
    # Pure elementwise VPU fold into an (8, 128) accumulator tile.
    acc_ref[...] += loss.reshape(block_rows // _SUBLANES, _SUBLANES, _LANES).sum(axis=0)


def _focal_sum_kernel(flag_ref, x_ref, part_ref, acc_ref, *,
                      gamma, block_rows, tiles_per_core, n_valid, need_mask):
    c = pl.program_id(0)   # core split (CORE_PARALLEL on v7x)
    j = pl.program_id(1)   # row tiles per core (arbitrary, carried accumulator)

    @pl.when(j == 0)
    def _():
        acc_ref[...] = jnp.zeros_like(acc_ref)

    loss = _focal_terms(flag_ref, x_ref, gamma)

    if need_mask:
        base_row = (c * tiles_per_core + j) * block_rows
        block_end = (base_row + block_rows) * _LANES   # exclusive flat end index

        @pl.when(block_end <= n_valid)
        def _():
            _fold_into(acc_ref, loss, block_rows)

        @pl.when(block_end > n_valid)
        def _():
            # Only the boundary block(s) pay for the iota/compare/select mask.
            row = lax.broadcasted_iota(jnp.int32, (block_rows, _LANES), 0)
            col = lax.broadcasted_iota(jnp.int32, (block_rows, _LANES), 1)
            flat_idx = (base_row + row) * _LANES + col
            _fold_into(acc_ref, jnp.where(flat_idx < n_valid, loss, 0.0), block_rows)
    else:
        _fold_into(acc_ref, loss, block_rows)

    @pl.when(j == pl.num_programs(1) - 1)
    def _():
        total = jnp.sum(acc_ref[...])                        # single cross-lane reduce
        part_ref[...] = jnp.broadcast_to(total, (1, _SUBLANES, _LANES))


def _focal_elem_kernel(flag_ref, x_ref, out_ref, *, gamma):
    out_ref[...] = _focal_terms(flag_ref, x_ref, gamma).astype(out_ref.dtype)


def focal_loss(inputs, targets, *, gamma=2, size_average=True, reduce=True,
               block_rows=4096, num_cores=None):
    """Pallas implementation of FocalLoss.forward (alpha is unused in forward)."""
    orig_shape = inputs.shape
    flat = inputs.reshape(-1)          # keep original dtype; cast inside kernel
    n = flat.shape[0]
    in_dtype = flat.dtype
    out_dtype = in_dtype if jnp.issubdtype(in_dtype, jnp.floating) else jnp.float32

    # Integer-valued float gamma -> int, so the kernel never emits a float pow
    # (exp + log) on the EUP.
    if isinstance(gamma, float) and float(gamma).is_integer():
        gamma = int(gamma)

    if num_cores is None:
        num_cores = _num_tensorcores()
    num_cores = max(1, int(num_cores))

    sub = _sublane_tile(in_dtype)

    # Lane-dense 2-D view.  The common n % 128 == 0 case is a free reshape
    # (no HBM copy); otherwise pad once to the next lane/sublane multiple.
    if n % _LANES == 0:
        rows_in = n // _LANES
        x2d = flat.reshape(rows_in, _LANES)
        padded = False
    else:
        n_in = _round_up(n, _LANES * sub)
        flat = jnp.pad(flat, (0, n_in - n))
        rows_in = n_in // _LANES
        x2d = flat.reshape(rows_in, _LANES)
        padded = True

    br = min(_round_up(block_rows, sub), _round_up(rows_in, sub))
    tiles_in_array = _cdiv(rows_in, br)
    if tiles_in_array < num_cores:
        num_cores = 1
    tiles_per_core = _cdiv(tiles_in_array, num_cores)
    coverage = num_cores * tiles_per_core * br * _LANES
    need_mask = coverage != n          # grid over-covers real elements
    last_block = tiles_in_array - 1

    def data_index_map(c, j, flag):
        del flag
        # Clamp so a (rare) fully out-of-range step re-reads / re-writes the
        # last block instead: the reduce kernel masks its contribution to zero,
        # the elementwise kernel rewrites identical values.
        return (jnp.minimum(c * tiles_per_core + j, last_block), 0)

    in_spec = pl.BlockSpec((br, _LANES), data_index_map)

    # targets[0][0][0] == 1 as an int32 scalar-prefetch flag (the rest of
    # `targets` is unused by the reference forward).
    flag = (targets.reshape(-1)[0] == 1).astype(jnp.int32).reshape(1)

    itemsize = jnp.dtype(in_dtype).itemsize

    if reduce:
        dims = ((_CORE_PARALLEL, pltpu.ARBITRARY) if num_cores > 1
                else ("arbitrary", "arbitrary"))
        cost = pl.CostEstimate(
            flops=6 * n, transcendentals=2 * n,
            bytes_accessed=n * itemsize + num_cores * _SUBLANES * _LANES * 4)
        kernel = functools.partial(
            _focal_sum_kernel, gamma=gamma, block_rows=br,
            tiles_per_core=tiles_per_core, n_valid=n, need_mask=need_mask)
        partials = pl.pallas_call(
            kernel,
            out_shape=jax.ShapeDtypeStruct((num_cores, _SUBLANES, _LANES), jnp.float32),
            grid_spec=pltpu.PrefetchScalarGridSpec(
                num_scalar_prefetch=1,
                grid=(num_cores, tiles_per_core),
                in_specs=[in_spec],
                out_specs=pl.BlockSpec((1, _SUBLANES, _LANES),
                                       lambda c, j, f: (c, 0, 0)),
                scratch_shapes=[pltpu.VMEM((_SUBLANES, _LANES), jnp.float32)],
            ),
            compiler_params=pltpu.CompilerParams(dimension_semantics=dims),
            cost_estimate=cost,
        )(flag, x2d)
        loss_sum = jnp.sum(partials[:, 0, 0])
        if size_average:
            return loss_sum / n      # divide by real element count (not padded)
        return loss_sum

    dims = ((_CORE_PARALLEL, pltpu.PARALLEL) if num_cores > 1
            else ("parallel", "parallel"))
    cost = pl.CostEstimate(
        flops=6 * n, transcendentals=2 * n,
        bytes_accessed=n * itemsize + n * jnp.dtype(out_dtype).itemsize)
    kernel = functools.partial(_focal_elem_kernel, gamma=gamma)
    out = pl.pallas_call(
        kernel,
        out_shape=jax.ShapeDtypeStruct((rows_in, _LANES), out_dtype),
        grid_spec=pltpu.PrefetchScalarGridSpec(
            num_scalar_prefetch=1,
            grid=(num_cores, tiles_per_core),
            in_specs=[in_spec],
            out_specs=pl.BlockSpec((br, _LANES), data_index_map),
        ),
        compiler_params=pltpu.CompilerParams(dimension_semantics=dims),
        cost_estimate=cost,
    )(flag, x2d)
    if padded:
        return out.reshape(-1)[:n].reshape(orig_shape)
    return out.reshape(orig_shape)


def _reference(inputs, targets, gamma=2, size_average=True, reduce=True):
    p = jax.nn.sigmoid(inputs.astype(jnp.float32))
    probs = jnp.where(targets.reshape(-1)[0] == 1, p, 1.0 - p)
    batch_loss = -((1.0 - probs) ** gamma) * jnp.log(probs)
    if not reduce:
        return batch_loss
    return batch_loss.mean() if size_average else batch_loss.sum()


if __name__ == "__main__":
    key = jax.random.PRNGKey(0)
    k_in, k_tgt, k_in2, k_tgt2 = jax.random.split(key, 4)

    class_num = 16  # FocalLoss(class_num): alpha = ones(class_num, 1) (unused in forward)
    alpha = jnp.ones((class_num, 1), jnp.float32)  # deterministic init; not used by forward

    B, S, C = 2, 8, class_num
    inputs = jax.random.normal(k_in, (B, S, C), dtype=jnp.float32)
    targets = (jax.random.uniform(k_tgt, (B, S, C)) > 0.5).astype(jnp.float32)
    targets = targets.at[0, 0, 0].set(1.0)      # probs = P branch

    # reduce=True, size_average=True (module defaults)
    loss = focal_loss(inputs, targets, gamma=2, size_average=True, reduce=True)
    jax.block_until_ready(loss)
    ref = _reference(inputs, targets)
    assert jnp.allclose(loss, ref, rtol=1e-5, atol=1e-5), (loss, ref)

    # reduce=True, size_average=False (sum); float gamma gets normalized to int
    loss_sum = focal_loss(inputs, targets, gamma=2.0, size_average=False, reduce=True)
    jax.block_until_ready(loss_sum)
    ref_sum = _reference(inputs, targets, size_average=False)
    assert jnp.allclose(loss_sum, ref_sum, rtol=1e-5, atol=1e-5), (loss_sum, ref_sum)

    # targets[0][0][0] == 0 branch (probs = 1 - P)
    targets0 = targets.at[0, 0, 0].set(0.0)
    loss0 = focal_loss(inputs, targets0)
    jax.block_until_ready(loss0)
    ref0 = _reference(inputs, targets0)
    assert jnp.allclose(loss0, ref0, rtol=1e-5, atol=1e-5), (loss0, ref0)

    # reduce=False (elementwise) path
    elem = focal_loss(inputs, targets, reduce=False)
    jax.block_until_ready(elem)
    assert elem.shape == inputs.shape
    assert jnp.allclose(elem, _reference(inputs, targets, reduce=False),
                        rtol=1e-5, atol=1e-5)

    # lane-misaligned shape exercises the (pad + slice) tail path
    B2, S2, C2 = 3, 7, 6                       # n = 126, not a multiple of 128
    inputs2 = jax.random.normal(k_in2, (B2, S2, C2), dtype=jnp.float32)
    targets2 = (jax.random.uniform(k_tgt2, (B2, S2, C2)) > 0.5).astype(jnp.float32)
    targets2 = targets2.at[0, 0, 0].set(1.0)
    loss2 = focal_loss(inputs2, targets2)
    elem2 = focal_loss(inputs2, targets2, reduce=False)
    jax.block_until_ready((loss2, elem2))
    assert jnp.allclose(loss2, _reference(inputs2, targets2), rtol=1e-5, atol=1e-5)
    assert jnp.allclose(elem2, _reference(inputs2, targets2, reduce=False),
                        rtol=1e-5, atol=1e-5)

    print("KERNEL_OK")
</pallas_src>

<mosaic_0001>
module attributes {stable_mosaic.version = 11 : i64} {
  func.func @_focal_sum_kernel(%arg0: i32, %arg1: i32, %arg2: memref<1xi32, #tpu.memory_space<smem>>, %arg3: memref<8x128xf32, #tpu.memory_space<vmem>>, %arg4: memref<1x8x128xf32, #tpu.memory_space<vmem>>, %arg5: memref<8x128xf32, #tpu.memory_space<vmem>>) attributes {dimension_semantics = [#tpu.dimension_semantics<arbitrary>, #tpu.dimension_semantics<arbitrary>], iteration_bounds = array<i64: 1, 1>, scalar_prefetch = 1 : i64, scratch_operands = 1 : i64, tpu.core_type = #tpu.core_type<tc>, window_params = [{transform_indices = @transform_0, window_bounds = array<i64: 8, 128>}, {transform_indices = @transform_1, window_bounds = array<i64: 1, 8, 128>}]} {
    %c0_i32 = arith.constant 0 : i32
    %0 = arith.cmpi eq, %arg1, %c0_i32 : i32
    %1 = arith.extui %0 : i1 to i32
    %c0_i32_0 = arith.constant 0 : i32
    %2 = arith.cmpi ne, %1, %c0_i32_0 : i32
    scf.if %2 {
      %cst_14 = arith.constant 0.000000e+00 : f32
      %35 = vector.broadcast %cst_14 : f32 to vector<8x128xf32>
      %c0_15 = arith.constant 0 : index
      %c0_16 = arith.constant 0 : index
      %36 = vector.load %arg5[%c0_15, %c0_16] : memref<8x128xf32, #tpu.memory_space<vmem>>, vector<8x128xf32>
      tpu.vector_store %arg5[%c0_15, %c0_16], %35 {strides = array<i32>} : memref<8x128xf32, #tpu.memory_space<vmem>>, vector<8x128xf32>,
    } else {
    }
    %c0 = arith.constant 0 : index
    %c0_1 = arith.constant 0 : index
    %3 = vector.load %arg3[%c0, %c0_1] : memref<8x128xf32, #tpu.memory_space<vmem>>, vector<8x128xf32>
    %c0_2 = arith.constant 0 : index
    %4 = memref.load %arg2[%c0_2] : memref<1xi32, #tpu.memory_space<smem>>
    %c1_i32 = arith.constant 1 : i32
    %5 = arith.cmpi eq, %4, %c1_i32 : i32
    %cst = arith.constant 1.000000e+00 : f32
    %cst_3 = arith.constant -1.000000e+00 : f32
    %6 = arith.select %5, %cst, %cst_3 : f32
    %7 = vector.broadcast %6 : f32 to vector<8x128xf32>
    %8 = arith.mulf %7, %3 : vector<8x128xf32>
    %9 = arith.negf %8 : vector<8x128xf32>
    %10 = math.exp %9 : vector<8x128xf32>
    %cst_4 = arith.constant 1.000000e+00 : f32
    %11 = vector.broadcast %cst_4 : f32 to vector<8x128xf32>
    %12 = arith.addf %11, %10 : vector<8x128xf32>
    %13 = arith.divf %11, %12 : vector<8x128xf32>
    %cst_5 = arith.constant 1.000000e+00 : f32
    %14 = vector.broadcast %cst_5 : f32 to vector<8x128xf32>
    %15 = arith.subf %14, %13 : vector<8x128xf32>
    %16 = arith.mulf %15, %15 : vector<8x128xf32>
    %cst_6 = arith.constant 0.000000e+00 : f32
    %17 = vector.broadcast %cst_6 : f32 to vector<8x128xf32>
    %18 = arith.subf %17, %16 : vector<8x128xf32>
    %19 = math.log %13 : vector<8x128xf32>
    %20 = arith.mulf %18, %19 : vector<8x128xf32>
    %c1_i32_7 = arith.constant 1 : i32
    %21 = arith.muli %arg0, %c1_i32_7 : i32
    %22 = arith.addi %21, %arg1 : i32
    %c8_i32 = arith.constant 8 : i32
    %23 = arith.muli %22, %c8_i32 : i32
    %c8_i32_8 = arith.constant 8 : i32
    %24 = arith.addi %23, %c8_i32_8 : i32
    %c128_i32 = arith.constant 128 : i32
    %25 = arith.muli %24, %c128_i32 : i32
    %c256_i32 = arith.constant 256 : i32
    %26 = arith.cmpi sle, %25, %c256_i32 : i32
    %27 = arith.extui %26 : i1 to i32
    %c0_i32_9 = arith.constant 0 : i32
    %28 = arith.cmpi ne, %27, %c0_i32_9 : i32
    scf.if %28 {
      %c0_14 = arith.constant 0 : index
      %c0_15 = arith.constant 0 : index
      %35 = vector.load %arg5[%c0_14, %c0_15] : memref<8x128xf32, #tpu.memory_space<vmem>>, vector<8x128xf32>
      %36 = vector.shape_cast %20 : vector<8x128xf32> to vector<1x8x128xf32>
      %cst_16 = arith.constant dense<0.000000e+00> : vector<8x128xf32>
      %37 = vector.multi_reduction <add>, %36, %cst_16 [0] : vector<1x8x128xf32> to vector<8x128xf32>
      %38 = arith.addf %35, %37 : vector<8x128xf32>
      %c0_17 = arith.constant 0 : index
      %c0_18 = arith.constant 0 : index
      %39 = vector.load %arg5[%c0_17, %c0_18] : memref<8x128xf32, #tpu.memory_space<vmem>>, vector<8x128xf32>
      tpu.vector_store %arg5[%c0_17, %c0_18], %38 {strides = array<i32>} : memref<8x128xf32, #tpu.memory_space<vmem>>, vector<8x128xf32>,
    } else {
    }
    %c256_i32_10 = arith.constant 256 : i32
    %29 = arith.cmpi sgt, %25, %c256_i32_10 : i32
    %30 = arith.extui %29 : i1 to i32
    %c0_i32_11 = arith.constant 0 : i32
    %31 = arith.cmpi ne, %30, %c0_i32_11 : i32
    scf.if %31 {
      %35 = tpu.iota {dimensions = array<i32: 0>} : vector<8x128xi32>
      %36 = tpu.iota {dimensions = array<i32: 1>} : vector<8x128xi32>
      %37 = vector.broadcast %23 : i32 to vector<8x128xi32>
      %38 = arith.addi %37, %35 : vector<8x128xi32>
      %c128_i32_14 = arith.constant 128 : i32
      %39 = vector.broadcast %c128_i32_14 : i32 to vector<8x128xi32>
      %40 = arith.muli %38, %39 : vector<8x128xi32>
      %41 = arith.addi %40, %36 : vector<8x128xi32>
      %c256_i32_15 = arith.constant 256 : i32
      %42 = vector.broadcast %c256_i32_15 : i32 to vector<8x128xi32>
      %43 = arith.cmpi slt, %41, %42 : vector<8x128xi32>
      %cst_16 = arith.constant 0.000000e+00 : f32
      %44 = vector.broadcast %cst_16 : f32 to vector<8x128xf32>
      %45 = arith.select %43, %20, %44 : vector<8x128xi1>, vector<8x128xf32>
      %c0_17 = arith.constant 0 : index
      %c0_18 = arith.constant 0 : index
      %46 = vector.load %arg5[%c0_17, %c0_18] : memref<8x128xf32, #tpu.memory_space<vmem>>, vector<8x128xf32>
      %47 = vector.shape_cast %45 : vector<8x128xf32> to vector<1x8x128xf32>
      %cst_19 = arith.constant dense<0.000000e+00> : vector<8x128xf32>
      %48 = vector.multi_reduction <add>, %47, %cst_19 [0] : vector<1x8x128xf32> to vector<8x128xf32>
      %49 = arith.addf %46, %48 : vector<8x128xf32>
      %c0_20 = arith.constant 0 : index
      %c0_21 = arith.constant 0 : index
      %50 = vector.load %arg5[%c0_20, %c0_21] : memref<8x128xf32, #tpu.memory_space<vmem>>, vector<8x128xf32>
      tpu.vector_store %arg5[%c0_20, %c0_21], %49 {strides = array<i32>} : memref<8x128xf32, #tpu.memory_space<vmem>>, vector<8x128xf32>,
    } else {
    }
    %c0_i32_12 = arith.constant 0 : i32
    %32 = arith.cmpi eq, %arg1, %c0_i32_12 : i32
    %33 = arith.extui %32 : i1 to i32
    %c0_i32_13 = arith.constant 0 : i32
    %34 = arith.cmpi ne, %33, %c0_i32_13 : i32
    scf.if %34 {
      %c0_14 = arith.constant 0 : index
      %c0_15 = arith.constant 0 : index
      %35 = vector.load %arg5[%c0_14, %c0_15] : memref<8x128xf32, #tpu.memory_space<vmem>>, vector<8x128xf32>
      %36 = vector.shape_cast %35 : vector<8x128xf32> to vector<1x8x128xf32>
      %cst_16 = arith.constant dense<0.000000e+00> : vector<1xf32>
      %37 = vector.multi_reduction <add>, %36, %cst_16 [1, 2] : vector<1x8x128xf32> to vector<1xf32>
      %38 = vector.shape_cast %37 : vector<1xf32> to vector<1x1x1xf32>
      %39 = vector.extract %38[0, 0, 0] : f32 from vector<1x1x1xf32>
      %40 = vector.broadcast %39 : f32 to vector<1x8x128xf32>
      %c0_17 = arith.constant 0 : index
      %c0_18 = arith.constant 0 : index
      %c0_19 = arith.constant 0 : index
      %41 = vector.load %arg4[%c0_17, %c0_18, %c0_19] : memref<1x8x128xf32, #tpu.memory_space<vmem>>, vector<1x8x128xf32>
      tpu.vector_store %arg4[%c0_17, %c0_18, %c0_19], %40 {strides = array<i32>} : memref<1x8x128xf32, #tpu.memory_space<vmem>>, vector<1x8x128xf32>,
    } else {
    }
    return
  }
  func.func @transform_0(%arg0: i32, %arg1: i32, %arg2: memref<1xi32, #tpu.memory_space<smem>>) -> (i32, i32) {
    %c1_i32 = arith.constant 1 : i32
    %0 = arith.muli %arg0, %c1_i32 : i32
    %1 = arith.addi %0, %arg1 : i32
    %c0_i32 = arith.constant 0 : i32
    %2 = arith.minsi %1, %c0_i32 : i32
    %c0_i32_0 = arith.constant 0 : i32
    %c0_i32_1 = arith.constant 0 : i32
    return %2, %c0_i32_0 : i32, i32
  }
  func.func @transform_1(%arg0: i32, %arg1: i32, %arg2: memref<1xi32, #tpu.memory_space<smem>>) -> (i32, i32, i32) {
    %c0_i32 = arith.constant 0 : i32
    %c0_i32_0 = arith.constant 0 : i32
    %c0_i32_1 = arith.constant 0 : i32
    return %arg0, %c0_i32, %c0_i32_0 : i32, i32, i32
  }
}

</mosaic_0001>

<bundles_post_ra>
// kernel: tpu_custom_call.1
= control target key start
LH: loop header
LB: loop body
LE: loop exit
PB: predicated region body
PF: predicated region fallthrough
CT: control target
= control target key end

     0   :  { %s198_s0 = inlined_call_operand.<no memory space> [shape: s32[1], index: 0, kind: input, shape index: {}]   ;;  %s199_s1 = inlined_call_operand.vmem [shape: f32[2,128], index: 1, kind: input, shape index: {}]   ;;  %s200_s2 = inlined_call_operand.hbm [shape: f32[1,8,128], index: 2, kind: output, shape index: {}]  }
   0x1   :  { %p60_p0 = scmp.eq.s32.totalorder %s198_s0, 1 }
   0x2   :  { %8 = vsyncpa [#allocation6], 0  ;;  %v58_v0 = vld [vmem:[%s199_s1] sm:$0xff]  ;;  %v92_v7 = vlaneseq  ;;  %s173_s0 = smov [#allocation5]  }
   0x3   :  { %s61_s13 = scalar_select %p60_p0, 1.0, -1.0 }
   0x4   :  { %v93_v8 = vshrl.u32 %v92_v7, 7  ;;  %v95_v10 = vand.u32 127, %v92_v7  ;;  %s127_s1 = sshll.u32 %s173_s0, 4  ;;  %s128_s1 = int_to_ptr.vmem [resolvable:$true] %s127_s1 }
   0x5   :  { %v62_v1 = vstv %s61_s13  ;;  %s151_s15 = scalar_lea.vmem %s128_s1, 128  ;;  %p156_p2 = scmp.lt.s32.totalorder %s128_s1, %s128_s1 }
   0x6   :  { %v63_v2 = vmul.f32 %v62_v1, %v58_v0  ;;  %v98_v11 = vmul.u32 128, %v93_v8  ;;  %p152_p1 = scmp.ne.s32.totalorder %s128_s1, %s151_s15  ;;  %p157_p3 = scmp.lt.s32.totalorder %s151_s15, %s151_s15 }
   0x8   :  { %v141_v3 = vmul.f32 -1.442695, %v63_v2  ;;  %v99_v13 = vadd.s32 %v98_v11, %v95_v10  ;;  %p158_p4 = por %p157_p3, %p156_p2 }
   0xa   :  { %145 = vpow2.f32 %v141_v3  ;;  %vm100_vm0 = vcmp.lt.s32.totalorder %v99_v13, 256  ;;  %p159_p5 = pnand %p158_p4, %p152_p1 }
  0x17   :  { %v146_v4 = vpop.eup %145 }
  0x18   :  { %v67_v5 = vadd.f32 1.0, %v146_v4 }
  0x1a   :  { %147 = vrcp.f32 %v67_v5 }
  0x27   :  { %v148_v6 = vpop.eup %147 }
  0x28   :  { %149 = vlog2.f32 %v148_v6  ;;  %v70_v9 = vsub.f32 1.0, %v148_v6 }
  0x2a   :  { %v71_v12 = vmul.f32 %v70_v9, %v70_v9 }
  0x2c   :  { %v72_v14 = vsub.f32 0.0, %v71_v12 }
  0x35   :  { %v150_v15 = vpop.eup %149 }
  0x36   :  { %v74_v16 = vmul.f32 0.6931472, %v150_v15 }
  0x38   :  { %v75_v17 = vmul.f32 %v74_v16, %v72_v14 }
  0x3a   :  { %v101_v18 = vsel %vm100_vm0, %v75_v17, 0.0 }
  0x3b   :  { %110 = vadd.xlane.f32.xlu0 %v101_v18 }
  0xc4   :  { %v111_v19 = vpop.xlane.xlu0 %110 }
  0xc5   :  { %v112_v20 = vrot.slane %v111_v19, 4 }
  0xc7   :  { %v113_v21 = vadd.f32 %v112_v20, %v111_v19 }
  0xc9   :  { %v114_v22 = vrot.slane %v113_v21, 2 }
  0xcb   :  { %v115_v23 = vadd.f32 %v114_v22, %v113_v21 }
  0xcd   :  { %v116_v24 = vrot.slane %v115_v23, 1 }
  0xcf   :  { %v117_v25 = vadd.f32 %v116_v24, %v115_v23 }
  0xd1   :  { %142 = vpush %v117_v25 }
 0x102   :  { %s143_s14 = spop %142 }
 0x103   :  { %v119_v26 = vstv %s143_s14 }
 0x104   :  { %120 = vst [vmem:[#allocation5] sm:$0xff] %v119_v26 }
 0x105   :  { %162 = shalt.err (!%p159_p5)
}
 0x106   :  { %130 = dma.vmem_to_hbm [thread:$0]  %s128_s1, 128, %s200_s2, [#allocation6]  }
 0x107   :  { %171 = dma.done.wait [#allocation6], 128  }
 0x108   :  { %172 = vsyncadd [#allocation6], 4294967168 }
 0x109   :  { %134 = vsyncpa [#allocation6], 1 }

</bundles_post_ra>
